<compile_context>
chip_gen: v5e
topology: v5e:2x2
jax: 0.10.0
libtpu: 0.0.40
codegen_flags: <defaults>
</compile_context>

<pallas_src>
import functools

import jax
import jax.numpy as jnp
from jax import lax
from jax.experimental import pallas as pl
from jax.experimental.pallas import tpu as pltpu


def _ceil_div(a, b):
    return -(-a // b)


def _ceil_to(a, m):
    return _ceil_div(a, m) * m


def _rebnconv_kernel(x_ref, xh_ref, w_ref, b_ref, o_ref, *, d, th, w_img):
    """One grid step = one batch element x one tile of `th` output rows.

    x_ref:  (1, th,   Wp, Cin)   bf16  padded rows [i*th, i*th + th)
    xh_ref: (1, halo, Wp, Cin)   bf16  padded rows [(i+1)*th, ...); only first 2d used
    w_ref:  (9*Cin, Cout_p)      bf16  BN-scale-folded weights, K index = (kh, kw, cin)
    b_ref:  (1, Cout_p)          f32   folded BN bias (zeros in padded channels)
    o_ref:  (1, th, W, Cout_p)   bf16  output tile
    """
    W = w_img
    Cin = x_ref.shape[-1]
    Cout_p = o_ref.shape[-1]

    # Receptive field of this tile: th + 2d padded rows (main tile + bottom halo).
    # Leading-dim concat: plain stacking, no lane/sublane relayout.
    xt = jnp.concatenate([x_ref[0], xh_ref[0, :2 * d]], axis=0)      # (th+2d, Wp, Cin)

    # 9-tap slab: the taps become part of the matmul K axis -> a single matmul and no
    # f32 accumulator read-modify-write passes.  kh slices are free leading-dim slices;
    # kw slices are sublane shifts by d.  (For Cin not a multiple of 128 the channel
    # concat costs some XLU relayout, but it is still cheaper than 9 K=Cin matmuls plus
    # 8 extra passes over a (th*W, Cout_p) f32 accumulator.)
    slab = jnp.concatenate(
        [xt[kh * d:kh * d + th, kw * d:kw * d + W, :]
         for kh in range(3) for kw in range(3)],
        axis=-1)                                                      # (th, W, 9*Cin)

    y = jnp.dot(slab.reshape(th * W, 9 * Cin), w_ref[...],
                preferred_element_type=jnp.float32)                   # MXU, f32 result
    y = jnp.maximum(y + b_ref[...], 0.0)                              # BN bias + ReLU
    o_ref[0] = y.reshape(th, W, Cout_p).astype(o_ref.dtype)


def rebnconv(x_nhwc, weight_oihw, gamma, beta, running_mean, running_var,
             *, dirate=1, eps=1e-5, h_tile=None):
    """REBNCONV forward (inference BN).

    x_nhwc: (B, H, W, Cin); weight_oihw: (Cout, Cin, 3, 3); BN params: (Cout,).
    Returns (B, H, W, Cout) in x_nhwc.dtype.
    """
    B, H, W, Cin = x_nhwc.shape
    Cout = weight_oihw.shape[0]
    d = int(dirate)
    assert d >= 1

    LANES = 128
    Cout_p = _ceil_to(Cout, LANES)            # lane-dense (unmasked) output stores
    Wp = W + 2 * d

    # ---- physical VMEM budget (generation-aware: 64 MiB on v7x, 128 MiB on v5e/v6e) ----
    try:
        vmem_cap = int(pltpu.get_tpu_info().vmem_capacity_bytes)
    except Exception:
        vmem_cap = 64 << 20                   # conservative fallback (v7x per-core VMEM)
    vmem_budget = int(0.70 * vmem_cap)

    # ---- H-tile selection: multiple of 8, >= 2d, M = th*W large enough to feed the MXU ----
    min_th = max(8, _ceil_to(2 * d, 8))
    if h_tile is not None:
        th = _ceil_to(int(h_tile), 8)
    else:
        th = min(64, max(8, _ceil_div(2048, W)))
        th = _ceil_to(th, 8)
    th = min(th, _ceil_to(H, 8))
    th = max(th, min_th)

    def halo_of(t):
        # bottom-halo block rows: exactly 2d when 2d tiles th, else a full tile.
        return 2 * d if t % (2 * d) == 0 else t

    def vmem_needed(t):
        hl = halo_of(t)
        return (2 * t * Wp * Cin * 2           # main input tile, double-buffered (bf16)
                + 2 * hl * Wp * Cin * 2        # halo tile, double-buffered
                + 2 * 9 * Cin * Cout_p * 2     # weights (double-buffered constant block)
                + 2 * Cout_p * 4               # bias
                + (t + 2 * d) * Wp * Cin * 2   # in-kernel window concat
                + t * W * 9 * Cin * 2          # 9-tap slab
                + t * W * Cout_p * 4           # f32 matmul result
                + 2 * t * W * Cout_p * 2       # output tile, double-buffered (bf16)
                + (2 << 20))                   # headroom (relayouts / spills)

    while th > min_th and vmem_needed(th) > vmem_budget:
        th -= 8

    halo = halo_of(th)
    halo_step = th // halo                     # halo-block index stride per grid step
    n_h = _ceil_div(H, th)
    Hp = n_h * th                              # padded output rows (sliced off below)
    Hp_in = Hp + halo                          # padded input rows

    # ---- fold inference BatchNorm into the conv; pad channels; cast to bf16 ----
    scale = (gamma / jnp.sqrt(running_var + eps)).astype(jnp.float32)       # (Cout,)
    bias = (beta - running_mean * scale).astype(jnp.float32)                # (Cout,)
    w = weight_oihw.astype(jnp.float32) * scale[:, None, None, None]        # (Cout,Cin,3,3)
    w = jnp.transpose(w, (2, 3, 1, 0))                                      # (kh,kw,Cin,Cout)
    w = jnp.pad(w, ((0, 0), (0, 0), (0, 0), (0, Cout_p - Cout)))
    w_k = w.reshape(9 * Cin, Cout_p).astype(jnp.bfloat16)                   # K=(kh,kw,cin)
    bias_p = jnp.pad(bias, (0, Cout_p - Cout)).reshape(1, Cout_p)

    # ---- zero halo around the activations (bf16), once, in HBM ----
    xp = jnp.pad(x_nhwc.astype(jnp.bfloat16),
                 ((0, 0), (d, Hp_in - H - d), (d, d), (0, 0)))               # (B,Hp_in,Wp,Cin)

    kernel = functools.partial(_rebnconv_kernel, d=d, th=th, w_img=W)

    flops = 2 * B * Hp * W * 9 * Cin * Cout_p
    bytes_accessed = (xp.size * 2                              # main activation pass
                      + B * n_h * halo * Wp * Cin * 2          # halo re-reads
                      + w_k.size * 2 + bias_p.size * 4
                      + B * Hp * W * Cout_p * 2)               # bf16 output writeback
    vmem_limit = int(min(max(2 * vmem_needed(th), 32 << 20), int(0.85 * vmem_cap)))

    out = pl.pallas_call(
        kernel,
        out_shape=jax.ShapeDtypeStruct((B, Hp, W, Cout_p), jnp.bfloat16),
        grid=(B, n_h),
        in_specs=[
            # main tile: padded rows [i*th, i*th + th)
            pl.BlockSpec((1, th, Wp, Cin), lambda b, i: (b, i, 0, 0)),
            # bottom halo: padded rows [(i+1)*th, (i+1)*th + halo)
            pl.BlockSpec((1, halo, Wp, Cin),
                         lambda b, i: (b, (i + 1) * halo_step, 0, 0)),
            # constant blocks (weights / bias)
            pl.BlockSpec((9 * Cin, Cout_p), lambda b, i: (0, 0)),
            pl.BlockSpec((1, Cout_p), lambda b, i: (0, 0)),
        ],
        out_specs=pl.BlockSpec((1, th, W, Cout_p), lambda b, i: (b, i, 0, 0)),
        compiler_params=pltpu.CompilerParams(
            dimension_semantics=("parallel", "parallel"),
            vmem_limit_bytes=vmem_limit),
        cost_estimate=pl.CostEstimate(
            flops=flops, transcendentals=0, bytes_accessed=bytes_accessed),
    )(xp, xp, w_k, bias_p)

    return out[:, :H, :, :Cout].astype(x_nhwc.dtype)


def _reference_f32(x_nhwc, weight_oihw, gamma, beta, running_mean, running_var,
                   *, dirate=1, eps=1e-5):
    """Exact f32 semantics of the PyTorch module (inference BN)."""
    d = dirate
    w_hwio = jnp.transpose(weight_oihw, (2, 3, 1, 0))
    conv = lax.conv_general_dilated(
        x_nhwc, w_hwio, window_strides=(1, 1), padding=[(d, d), (d, d)],
        rhs_dilation=(d, d), dimension_numbers=("NHWC", "HWIO", "NHWC"),
        precision=lax.Precision.HIGHEST)
    scale = gamma / jnp.sqrt(running_var + eps)
    bias = beta - running_mean * scale
    return jnp.maximum(conv * scale + bias, 0.0)


def _reference_bf16_inputs(x_nhwc, weight_oihw, gamma, beta, running_mean, running_var,
                           *, dirate=1, eps=1e-5):
    """Same bf16 rounding of activations / folded weights as the kernel (f32 accum)."""
    d = dirate
    scale = gamma / jnp.sqrt(running_var + eps)
    bias = beta - running_mean * scale
    w = (weight_oihw.astype(jnp.float32) * scale[:, None, None, None])
    w = w.astype(jnp.bfloat16).astype(jnp.float32)
    x = x_nhwc.astype(jnp.bfloat16).astype(jnp.float32)
    w_hwio = jnp.transpose(w, (2, 3, 1, 0))
    conv = lax.conv_general_dilated(
        x, w_hwio, window_strides=(1, 1), padding=[(d, d), (d, d)],
        rhs_dilation=(d, d), dimension_numbers=("NHWC", "HWIO", "NHWC"),
        precision=lax.Precision.HIGHEST)
    return jnp.maximum(conv + bias, 0.0)


if __name__ == "__main__":
    B, H, W = 2, 16, 16
    in_ch, out_ch = 4, 8

    key = jax.random.PRNGKey(0)
    kx, kw_, kg, kb, km, kv = jax.random.split(key, 6)

    # PyTorch-style NCHW input, moved to NHWC for the kernel.
    x_nchw = jax.random.normal(kx, (B, in_ch, H, W), dtype=jnp.float32)
    x_nhwc = jnp.transpose(x_nchw, (0, 2, 3, 1))

    weight = jax.random.normal(kw_, (out_ch, in_ch, 3, 3), dtype=jnp.float32) * 0.1
    gamma = 1.0 + 0.1 * jax.random.normal(kg, (out_ch,), dtype=jnp.float32)
    beta = 0.1 * jax.random.normal(kb, (out_ch,), dtype=jnp.float32)
    running_mean = 0.05 * jax.random.normal(km, (out_ch,), dtype=jnp.float32)
    running_var = 1.0 + 0.1 * jnp.abs(jax.random.normal(kv, (out_ch,), dtype=jnp.float32))

    # (dirate, h_tile): h_tile=8 exercises multi-tile H; h_tile=None exercises auto tiling.
    for dirate, h_tile in ((1, 8), (2, 8), (1, None)):
        out = rebnconv(x_nhwc, weight, gamma, beta, running_mean, running_var,
                       dirate=dirate, h_tile=h_tile)
        out = jax.block_until_ready(out)
        assert out.shape == (B, H, W, out_ch)

        ref_tight = _reference_bf16_inputs(x_nhwc, weight, gamma, beta,
                                           running_mean, running_var, dirate=dirate)
        assert jnp.allclose(out, ref_tight, atol=2.5e-2, rtol=2.5e-2), \
            f"structural mismatch vs bf16-input reference (dirate={dirate}, h_tile={h_tile})"

        ref_f32 = _reference_f32(x_nhwc, weight, gamma, beta,
                                 running_mean, running_var, dirate=dirate)
        assert jnp.allclose(out, ref_f32, atol=7e-2, rtol=7e-2), \
            f"mismatch vs f32 reference (dirate={dirate}, h_tile={h_tile})"

    # Ragged H (H % th != 0), odd channel counts, batch 1 — exercises the H-padding path.
    x2 = jax.random.normal(kx, (1, 20, 16, 3), dtype=jnp.float32)
    w2 = jax.random.normal(kw_, (5, 3, 3, 3), dtype=jnp.float32) * 0.1
    g2 = jnp.ones((5,), jnp.float32)
    b2 = jnp.zeros((5,), jnp.float32)
    m2 = jnp.zeros((5,), jnp.float32)
    v2 = jnp.ones((5,), jnp.float32)
    out2 = jax.block_until_ready(
        rebnconv(x2, w2, g2, b2, m2, v2, dirate=2, h_tile=8))
    assert out2.shape == (1, 20, 16, 5)
    ref2 = _reference_f32(x2, w2, g2, b2, m2, v2, dirate=2)
    assert jnp.allclose(out2, ref2, atol=7e-2, rtol=7e-2), "mismatch on ragged-H case"

    print("KERNEL_OK")
</pallas_src>

<mosaic_0001>
module attributes {stable_mosaic.version = 11 : i64} {
  func.func @_rebnconv_kernel(%arg0: i32, %arg1: i32, %arg2: memref<1x8x18x4xbf16, #tpu.memory_space<vmem>>, %arg3: memref<1x2x18x4xbf16, #tpu.memory_space<vmem>>, %arg4: memref<36x128xbf16, #tpu.memory_space<vmem>>, %arg5: memref<1x128xf32, #tpu.memory_space<vmem>>, %arg6: memref<1x8x16x128xbf16, #tpu.memory_space<vmem>>) attributes {dimension_semantics = [#tpu.dimension_semantics<parallel>, #tpu.dimension_semantics<parallel>], iteration_bounds = array<i64: 2, 2>, scalar_prefetch = 0 : i64, scratch_operands = 0 : i64, tpu.core_type = #tpu.core_type<tc>, window_params = [{transform_indices = @transform_0, window_bounds = array<i64: 1, 8, 18, 4>}, {transform_indices = @transform_1, window_bounds = array<i64: 1, 2, 18, 4>}, {pipeline_mode = #tpu.pipeline_mode<synchronous>, transform_indices = @transform_2, window_bounds = array<i64: 36, 128>}, {pipeline_mode = #tpu.pipeline_mode<synchronous>, transform_indices = @transform_3, window_bounds = array<i64: 1, 128>}, {transform_indices = @transform_4, window_bounds = array<i64: 1, 8, 16, 128>}]} {
    %c0 = arith.constant 0 : index
    %c0_0 = arith.constant 0 : index
    %c0_1 = arith.constant 0 : index
    %c0_2 = arith.constant 0 : index
    %0 = vector.load %arg2[%c0, %c0_0, %c0_1, %c0_2] : memref<1x8x18x4xbf16, #tpu.memory_space<vmem>>, vector<1x8x18x4xbf16>
    %1 = vector.shape_cast %0 : vector<1x8x18x4xbf16> to vector<8x18x4xbf16>
    %c0_3 = arith.constant 0 : index
    %c0_4 = arith.constant 0 : index
    %c0_5 = arith.constant 0 : index
    %c0_6 = arith.constant 0 : index
    %2 = vector.load %arg3[%c0_3, %c0_4, %c0_5, %c0_6] : memref<1x2x18x4xbf16, #tpu.memory_space<vmem>>, vector<1x2x18x4xbf16>
    %3 = vector.shape_cast %2 : vector<1x2x18x4xbf16> to vector<2x18x4xbf16>
    %4 = tpu.concatenate %1, %3 in 0 : vector<8x18x4xbf16>, vector<2x18x4xbf16> -> vector<10x18x4xbf16>
    %5 = vector.extract_strided_slice %4 {offsets = [0, 0, 0], sizes = [8, 16, 4], strides = [1, 1, 1]} : vector<10x18x4xbf16> to vector<8x16x4xbf16>
    %6 = vector.extract_strided_slice %4 {offsets = [0, 1, 0], sizes = [8, 16, 4], strides = [1, 1, 1]} : vector<10x18x4xbf16> to vector<8x16x4xbf16>
    %7 = vector.extract_strided_slice %4 {offsets = [0, 2, 0], sizes = [8, 16, 4], strides = [1, 1, 1]} : vector<10x18x4xbf16> to vector<8x16x4xbf16>
    %8 = vector.extract_strided_slice %4 {offsets = [1, 0, 0], sizes = [8, 16, 4], strides = [1, 1, 1]} : vector<10x18x4xbf16> to vector<8x16x4xbf16>
    %9 = vector.extract_strided_slice %4 {offsets = [1, 1, 0], sizes = [8, 16, 4], strides = [1, 1, 1]} : vector<10x18x4xbf16> to vector<8x16x4xbf16>
    %10 = vector.extract_strided_slice %4 {offsets = [1, 2, 0], sizes = [8, 16, 4], strides = [1, 1, 1]} : vector<10x18x4xbf16> to vector<8x16x4xbf16>
    %11 = vector.extract_strided_slice %4 {offsets = [2, 0, 0], sizes = [8, 16, 4], strides = [1, 1, 1]} : vector<10x18x4xbf16> to vector<8x16x4xbf16>
    %12 = vector.extract_strided_slice %4 {offsets = [2, 1, 0], sizes = [8, 16, 4], strides = [1, 1, 1]} : vector<10x18x4xbf16> to vector<8x16x4xbf16>
    %13 = vector.extract_strided_slice %4 {offsets = [2, 2, 0], sizes = [8, 16, 4], strides = [1, 1, 1]} : vector<10x18x4xbf16> to vector<8x16x4xbf16>
    %14 = tpu.concatenate %5, %6, %7, %8, %9, %10, %11, %12, %13 in 2 : vector<8x16x4xbf16>, vector<8x16x4xbf16>, vector<8x16x4xbf16>, vector<8x16x4xbf16>, vector<8x16x4xbf16>, vector<8x16x4xbf16>, vector<8x16x4xbf16>, vector<8x16x4xbf16>, vector<8x16x4xbf16> -> vector<8x16x36xbf16>
    %15 = vector.shape_cast %14 : vector<8x16x36xbf16> to vector<128x36xbf16>
    %c0_7 = arith.constant 0 : index
    %c0_8 = arith.constant 0 : index
    %16 = vector.load %arg4[%c0_7, %c0_8] : memref<36x128xbf16, #tpu.memory_space<vmem>>, vector<36x128xbf16>
    %cst = arith.constant dense<0.000000e+00> : vector<128x128xf32>
    %17 = tpu.matmul %15, %16, %cst {dimension_numbers = #tpu.dot_dimension_numbers<[1], [0], [0], [1], [0, 0, 1, 1], [], []>} : vector<128x36xbf16>, vector<36x128xbf16>, vector<128x128xf32> -> vector<128x128xf32>
    %c0_9 = arith.constant 0 : index
    %c0_10 = arith.constant 0 : index
    %18 = vector.load %arg5[%c0_9, %c0_10] : memref<1x128xf32, #tpu.memory_space<vmem>>, vector<1x128xf32>
    %19 = vector.broadcast %18 : vector<1x128xf32> to vector<128x128xf32>
    %20 = arith.addf %17, %19 : vector<128x128xf32>
    %cst_11 = arith.constant 0.000000e+00 : f32
    %21 = vector.broadcast %cst_11 : f32 to vector<128x128xf32>
    %22 = arith.maximumf %20, %21 : vector<128x128xf32>
    %23 = vector.shape_cast %22 : vector<128x128xf32> to vector<8x16x128xf32>
    %24 = arith.truncf %23 : vector<8x16x128xf32> to vector<8x16x128xbf16>
    %c0_12 = arith.constant 0 : index
    %c0_13 = arith.constant 0 : index
    %c0_14 = arith.constant 0 : index
    %c0_15 = arith.constant 0 : index
    %25 = vector.load %arg6[%c0_12, %c0_13, %c0_14, %c0_15] : memref<1x8x16x128xbf16, #tpu.memory_space<vmem>>, vector<1x8x16x128xbf16>
    %26 = vector.shape_cast %25 : vector<1x8x16x128xbf16> to vector<8x16x128xbf16>
    %27 = vector.shape_cast %24 : vector<8x16x128xbf16> to vector<1x8x16x128xbf16>
    tpu.vector_store %arg6[%c0_12, %c0_13, %c0_14, %c0_15], %27 {strides = array<i32>} : memref<1x8x16x128xbf16, #tpu.memory_space<vmem>>, vector<1x8x16x128xbf16>,
    return
  }
  func.func @transform_0(%arg0: i32, %arg1: i32) -> (i32, i32, i32, i32) {
    %c0_i32 = arith.constant 0 : i32
    %c0_i32_0 = arith.constant 0 : i32
    %c0_i32_1 = arith.constant 0 : i32
    return %arg0, %arg1, %c0_i32, %c0_i32_0 : i32, i32, i32, i32
  }
  func.func @transform_1(%arg0: i32, %arg1: i32) -> (i32, i32, i32, i32) {
    %c1_i32 = arith.constant 1 : i32
    %0 = arith.addi %arg1, %c1_i32 : i32
    %c4_i32 = arith.constant 4 : i32
    %1 = arith.muli %0, %c4_i32 : i32
    %c0_i32 = arith.constant 0 : i32
    %c0_i32_0 = arith.constant 0 : i32
    %c0_i32_1 = arith.constant 0 : i32
    return %arg0, %1, %c0_i32, %c0_i32_0 : i32, i32, i32, i32
  }
  func.func @transform_2(%arg0: i32, %arg1: i32) -> (i32, i32) {
    %c0_i32 = arith.constant 0 : i32
    %c0_i32_0 = arith.constant 0 : i32
    %c0_i32_1 = arith.constant 0 : i32
    return %c0_i32, %c0_i32_0 : i32, i32
  }
  func.func @transform_3(%arg0: i32, %arg1: i32) -> (i32, i32) {
    %c0_i32 = arith.constant 0 : i32
    %c0_i32_0 = arith.constant 0 : i32
    %c0_i32_1 = arith.constant 0 : i32
    return %c0_i32, %c0_i32_0 : i32, i32
  }
  func.func @transform_4(%arg0: i32, %arg1: i32) -> (i32, i32, i32, i32) {
    %c0_i32 = arith.constant 0 : i32
    %c0_i32_0 = arith.constant 0 : i32
    %c0_i32_1 = arith.constant 0 : i32
    return %arg0, %arg1, %c0_i32, %c0_i32_0 : i32, i32, i32, i32
  }
}

</mosaic_0001>

<bundles_post_ra>
// kernel: tpu_custom_call.1
= control target key start
LH: loop header
LB: loop body
LE: loop exit
PB: predicated region body
PF: predicated region fallthrough
CT: control target
= control target key end

     0   :  { %9 = vsyncpa [#allocation3], 0  ;;  %s1995_s0 = inlined_call_operand.vmem [shape: bf16[2,18,18,4], index: 0, kind: input, shape index: {}]   ;;  %s1996_s1 = inlined_call_operand.vmem [shape: bf16[2,18,18,4], index: 1, kind: input, shape index: {}]   ;;  %s1997_s2 = inlined_call_operand.vmem [shape: bf16[36,128], index: 2, kind: input, shape index: {}]   ;;  %s1998_s3 = inlined_call_operand.vmem [shape: f32[1,128], index: 3, kind: input, shape index: {}]   ;;  %s1999_s4 = inlined_call_operand.hbm [shape: bf16[2,16,16,128], index: 4, kind: output, shape index: {}]  }
   0x1   :  { %11 = vsyncpa [#allocation3 + $0x1], 0  ;;  %s1470_s15 = smov 0   ;;  %s1472_s16 = smov 0  }
   0x2   :  { %s1474_s17 = smov 0   ;;  %s1476_s18 = smov 0  }
   0x3   :  { %s1478_s19 = smov 0   ;;  %s1480_s20 = smov 0  }
   0x4   :  { %s1482_s21 = smov 0   ;;  %s1484_s22 = smov 0  }
   0x5 LB: > { %s1102_s23 = sadd.s32 4294967295, %s1434_s22   ;;  %s1103_s24 = sadd.s32 4294967294, %s1434_s22   ;;  %s1434_s22 = sphi %s1484_s22, %s17_s22   ;;  %s1430_s21 = sphi %s1482_s21, %s2009_s21   ;;  %s1426_s20 = sphi %s1480_s20, %s2008_s20   ;;  %s1422_s19 = sphi %s1478_s19, %s2007_s19   ;;  %s1418_s18 = sphi %s1476_s18, %s2006_s18   ;;  %s1414_s17 = sphi %s1474_s17, %s2005_s17   ;;  %s1410_s16 = sphi %s1472_s16, %s2004_s16   ;;  %s1406_s15 = sphi %s1470_s15, %s2003_s15  }
   0x6   : > { %s26_s25 = sadd.s32 1, %s1426_s20  ;;  %s29_s26 = sadd.s32 1, %s1430_s21 }
   0x7   : > { %p27_p0 = scmp.ge.s32.totalorder %s26_s25, 2  ;;  %p150_p1 = scmp.ne.s32.totalorder %s1414_s17, %s1410_s16 }
   0x8   : > { %p151_p2 = scmp.eq.s32.totalorder %s1102_s23, 3  ;;  %p156_p5 = scmp.ne.s32.totalorder %s1410_s16, %s1406_s15 }
   0x9   : > { %s2011_s25 = smov (%p27_p0, %s26_s25), 0  ;;  %s2013_s26 = smov (!%p27_p0, %s29_s26), %s1430_s21 }
   0xa   : > { %s136_s27 = ssub.s32 %s1426_s20, %s2011_s25  ;;  %p1521_p3 = por %p151_p2, %p150_p1 }
   0xb   : > { %p31_p4 = scmp.ge.s32.totalorder %s2013_s26, 2  ;;  %p157_p6 = scmp.eq.s32.totalorder %s1103_s24, 3 }
   0xc   : > { %p1108_p7 = scmp.ge.s32.totalorder %s1434_s22, 1  ;;  %p223_p9 = scmp.lt.s32.totalorder %s1434_s22, 5 }
   0xd   : > { %s2015_s26 = smov (%p31_p4, %s2013_s26), 0  ;;  %p1530_p8 = por %p157_p6, %p156_p5 }
   0xe   : > { %s135_s30 = ssub.s32 %s1430_s21, %s2015_s26  ;;  %s140_s5 = sadd.s32 1, %s1414_s17 }
   0xf   : > { %s137_s6 = sor.u32 %s136_s27, %s135_s30  ;;  %p224_p10 = pnand %p1108_p7, %p223_p9 }
  0x10   : > { %p138_p11 = scmp.eq.s32.totalorder %s137_s6, 0  ;;  %s1542_s8 = sshll.u32 (!%p224_p10), %s1418_s18, 3 }
  0x11   : > { %227 = sbr.rel (%p224_p10) target bundleno = 468 (0x1d4), region = 36  ;;  %p277_p12 = scmp.lt.s32.totalorder (!%p224_p10), %s1422_s19, 1 }
  0x12   : > { %s1539_s7 = scalar_select %p138_p11, %s1414_s17, %s140_s5  }
  0x13   : > { %p279_p13 = scmp.lt.s32.totalorder (!%p224_p10), %s1542_s8, 17  ;;  %s1239_s30 = sadd.s32 (!%p224_p10), 8, %s1542_s8 }
  0x14   : > { %s1436_s5 = smov (!%p224_p10), 12   ;;  %p1583_p0 = scmp.lt.s32.totalorder (!%p224_p10), %s1239_s30, 17 }
  0x15   : > { %s1441_s6 = smov (!%p224_p10), 24  }
  0x16   : > { %s1547_s9 = scalar_select %p277_p12, %s1422_s19, 1  ;;  %vm516_vm0 = vcmask 1046528   ;;  %vm403_vm1 = vsmask.f32 7424  ;;  %vm876_vm2 = vcmask 1041408   ;;  %vm699_vm3 = vcmask 31744  }
  0x17   : > { %s280_s10 = scalar_select %p279_p13, %s1542_s8, 17  ;;  %vm716_vm4 = vcmask 64512   ;;  %vm733_vm5 = vcmask 97280   ;;  %vm750_vm6 = vcmask 130048   ;;  %vm767_vm7 = vcmask 162816  }
  0x18   : > { %s1257_s11 = smul.u32 54, %s1547_s9  ;;  %s2017_s30 = smov (!%p1583_p0, %s1239_s30), 17  ;;  %vm784_vm8 = vcmask 195584   ;;  %vm818_vm9 = vcmask 261120   ;;  %vm801_vm10 = vcmask 228352   ;;  %vm859_vm11 = vcmask 293888  }
  0x19   : > { %s1256_s12 = smul.u32 3, %s280_s10  ;;  %s1437_s10 = smov 8  }
  0x1a   : > { %s1258_s8 = smul.u32 3, %s2017_s30  ;;  %s1440_s30 = smov 16  }
  0x1b   : > { %s283_s13 = sadd.s32 %s1257_s11, %s1256_s12  ;;  %s1438_s12 = smov 4  }
  0x1c   : > { %s1111_s14 = sshll.u32 %s283_s13, 2  ;;  %s301_s13 = sadd.s32 %s1258_s8, %s1257_s11 }
  0x1d   : > { %s1556_s27 = scalar_lea.vmem %s1995_s0, %s1111_s14  ;;  %s1439_s14 = smov 20  }
  0x1e   : > { %v1559_v0 = vld [vmem:[%s1556_s27 + $0x30] sm:$0xff]  ;;  %v323_v1 = vld [vmem:[%s1556_s27 + $0x38] sm:$0x1]  ;;  %v1563_v2 = vld [vmem:[%s1556_s27 + $0x48] sm:$0xff]  ;;  %s1114_s23 = sshll.u32 %s301_s13, 2  ;;  %s1442_s8 = smov 28  }
  0x1f   : > { %v391_v3 = vunpack.c.l.b16 %v323_v1  ;;  %v329_v4 = vld [vmem:[%s1556_s27 + $0x50] sm:$0x1]  ;;  %v453_v5 = vshrl.u32 %v1559_v0, 16  ;;  %v455_v6 = vshll.u32 %v1559_v0, 16  ;;  %v332_v8 = vld [vmem:[%s1556_s27 + $0x5c] sm:$0x1]  ;;  %s1644_s24 = scalar_lea.vmem %s1996_s1, %s1114_s23 }
  0x20   : > { %v393_v7 = vunpack.c.l.b16 %v329_v4  ;;  %v1570_v9 = vld [vmem:[%s1556_s27 + $0x3c] sm:$0xff]  ;;  %v529_v11 = vrot.slane %v1559_v0, 1  ;;  %v479_v12 = vshll.u32 %v1563_v2, 16  ;;  %v1576_v15 = vld [vmem:[%s1556_s27 + $0x54] sm:$0xff]  ;;  %v394_v18 = vunpack.c.l.b16 %v332_v8  ;;  %v326_v19 = vld [vmem:[%s1556_s27 + $0x44] sm:$0x1] }
  0x21   : > { %v399_v10 = vpack.c.b16 %v391_v3, %v391_v3  ;;  %v457_v13 = vrot.slane %v455_v6, 1  ;;  %570 = vrot.lane.b32.xlu2 %v1570_v9, %s1436_s5  ;;  %v477_v21 = vshrl.u32 %v1563_v2, 16  ;;  %v491_v26 = vshll.u32 %v1576_v15, 16  ;;  %v317_v49 = vld [vmem:[%s1556_s27 + $0x20] sm:$0x1]  ;;  %v1633_v54 = vld [vmem:[%s1556_s27 + $0x18] sm:$0xff] }
  0x22   : > { %v401_v14 = vpack.c.b16 %v393_v7, %v393_v7  ;;  %v481_v24 = vrot.slane %v479_v12, 1  ;;  %v392_v27 = vunpack.c.l.b16 %v326_v19  ;;  %v535_v29 = vrot.slane %v1563_v2, 1  ;;  %v311_v52 = vld [vmem:[%s1556_s27 + $0x8] sm:$0x1]  ;;  %v1639_v57 = vld [vmem:[%s1556_s27] sm:$0xff] }
  0x23   : > { %v530_v16 = vrot.slane %v399_v10, 1  ;;  %v460_v17 = vshll.u32 %v399_v10, 16  ;;  %v458_v20 = vor.u32 %v457_v13, %v453_v5  ;;  %v402_v31 = vpack.c.b16 %v394_v18, %v394_v18  ;;  %v1653_v63 = vld [vmem:[%s1644_s24] sm:$0xff]  ;;  %v335_v4 = vld [vmem:[%s1644_s24 + $0x8] sm:$0x1] }
  0x24   : > { %v484_v25 = vshll.u32 %v401_v14, 16  ;;  %v536_v30 = vrot.slane %v401_v14, 1  ;;  %v482_v32 = vor.u32 %v481_v24, %v477_v21  ;;  %v400_v34 = vpack.c.b16 %v392_v27, %v392_v27 }
  0x25   : > { %v1589_v22 = vsel %vm516_vm0, %v529_v11, %v530_v16  ;;  %v462_v23 = vrot.slane %v460_v17, 1  ;;  %v467_v35 = vshll.u32 %v1570_v9, 16  ;;  %v489_v36 = vshrl.u32 %v1576_v15, 16 }
  0x26   : > { %549 = vrot.lane.b32.xlu1 %v1589_v22, %s1437_s10  ;;  %v486_v33 = vrot.slane %v484_v25, 1  ;;  %v493_v37 = vrot.slane %v491_v26, 1  ;;  %v1609_v38 = vsel %vm516_vm0, %v535_v29, %v536_v30  ;;  %v496_v39 = vshll.u32 %v402_v31, 16  ;;  %v320_v30 = vld [vmem:[%s1556_s27 + $0x2c] sm:$0x1] }
  0x27   : > { %v1595_v28 = vsel %vm403_vm1, %v458_v20, %v462_v23  ;;  %v532_v40 = vrot.slane %v1570_v9, 1  ;;  %v533_v41 = vrot.slane %v400_v34, 1  ;;  %v465_v43 = vshrl.u32 %v1570_v9, 16 }
  0x28   : > { %508 = vrot.lane.b32.xlu0 %v1595_v28, %s1438_s12  ;;  %v1613_v42 = vsel %vm403_vm1, %v482_v32, %v486_v33  ;;  %v469_v44 = vrot.slane %v467_v35, 1  ;;  %v472_v45 = vshll.u32 %v400_v34, 16  ;;  %v494_v46 = vor.u32 %v493_v37, %v489_v36  ;;  %v314_v33 = vld [vmem:[%s1556_s27 + $0x14] sm:$0x1]  ;;  %v1687_v37 = vld [vmem:[%s1556_s27 + $0x24] sm:$0xff] }
  0x29   : > { %574 = vrot.lane.b32.xlu2 %v1576_v15, %s1436_s5  ;;  %v498_v47 = vrot.slane %v496_v39, 1  ;;  %v1619_v48 = vsel %vm516_vm0, %v532_v40, %v533_v41  ;;  %v389_v55 = vunpack.c.l.b16 %v317_v49  ;;  %v387_v58 = vunpack.c.l.b16 %v311_v52 }
  0x2a   : > { %v470_v50 = vor.u32 %v469_v44, %v465_v43  ;;  %v474_v51 = vrot.slane %v472_v45, 1  ;;  %v431_v60 = vshll.u32 %v1633_v54, 16  ;;  %v538_v61 = vrot.slane %v1576_v15, 1  ;;  %v1693_v43 = vld [vmem:[%s1556_s27 + $0xc] sm:$0xff]  ;;  %s1443_s27 = smov 32  }
  0x2b   : > { %v1630_v53 = vsel %vm403_vm1, %v494_v46, %v498_v47  ;;  %v397_v59 = vpack.c.b16 %v389_v55, %v389_v55  ;;  %v539_v62 = vrot.slane %v402_v31, 1  ;;  %v395_v1 = vpack.c.b16 %v387_v58, %v387_v58 }
  0x2c   : > { %v1636_v56 = vsel %vm403_vm1, %v470_v50, %v474_v51  ;;  %v407_v3 = vshll.u32 %v1639_v57, 16  ;;  %v429_v5 = vshrl.u32 %v1633_v54, 16  ;;  %v433_v6 = vrot.slane %v431_v60, 1 }
  0x2d   : > { %v436_v7 = vshll.u32 %v397_v59, 16  ;;  %v1661_v8 = vsel %vm516_vm0, %v538_v61, %v539_v62  ;;  %v405_v10 = vshrl.u32 %v1639_v57, 16  ;;  %v412_v12 = vshll.u32 %v395_v1, 16 }
  0x2e   : > { %553 = vrot.lane.b32.xlu1 %v1609_v38, %s1437_s10  ;;  %v409_v11 = vrot.slane %v407_v3, 1  ;;  %v579_v13 = vunpack.c.l.b16 %v335_v4  ;;  %v434_v14 = vor.u32 %v433_v6, %v429_v5  ;;  %v584_v20 = vshll.u32 %v1653_v63, 16 }
  0x2f   : > { %v438_v16 = vrot.slane %v436_v7, 1  ;;  %v414_v18 = vrot.slane %v412_v12, 1  ;;  %v523_v23 = vrot.slane %v1633_v54, 1  ;;  %v524_v24 = vrot.slane %v397_v59, 1 }
  0x30   : > { %512 = vrot.lane.b32.xlu0 %v1613_v42, %s1438_s12  ;;  %v410_v17 = vor.u32 %v409_v11, %v405_v10  ;;  %v580_v19 = vpack.c.b16 %v579_v13, %v579_v13  ;;  %v582_v26 = vshrl.u32 %v1653_v63, 16  ;;  %v586_v27 = vrot.slane %v584_v20, 1 }
  0x31   : > { %620 = vrot.lane.b32.xlu2 %v1619_v48, %s1439_s14  ;;  %v1672_v21 = vsel %vm403_vm1, %v434_v14, %v438_v16  ;;  %v517_v31 = vrot.slane %v1639_v57, 1  ;;  %v518_v32 = vrot.slane %v395_v1, 1  ;;  %v1683_v34 = vsel %vm516_vm0, %v523_v23, %v524_v24  ;;  %v1194_v23 = vld [vmem:[%s1644_s24 + $0xc] sm:$0xff] }
  0x32   : > { %v415_v25 = vsel %vm403_vm1, %v410_v17, %v414_v18  ;;  %v589_v29 = vshll.u32 %v580_v19, 16  ;;  %v587_v35 = vor.u32 %v586_v27, %v582_v26  ;;  %v390_v39 = vunpack.c.l.b16 %v320_v30 }
  0x33   : > { %v388_v40 = vunpack.c.l.b16 %v314_v33  ;;  %v519_v41 = vsel %vm516_vm0, %v517_v31, %v518_v32  ;;  %v443_v44 = vshll.u32 %v1687_v37, 16  ;;  %v609_v47 = vrot.slane %v1653_v63, 1 }
  0x34   : > { %v591_v36 = vrot.slane %v589_v29, 1  ;;  %v398_v46 = vpack.c.b16 %v390_v39, %v390_v39  ;;  %v610_v49 = vrot.slane %v580_v19, 1  ;;  %v419_v51 = vshll.u32 %v1693_v43, 16  ;;  %v338_v19 = vld [vmem:[%s1644_s24 + $0x14] sm:$0x1] }
  0x35   : > { %v396_v50 = vpack.c.b16 %v388_v40, %v388_v40  ;;  %v441_v52 = vshrl.u32 %v1687_v37, 16  ;;  %v445_v55 = vrot.slane %v443_v44, 1  ;;  %v417_v60 = vshrl.u32 %v1693_v43, 16 }
  0x36   : > { %605 = vrot.lane.b32.xlu1 %v1630_v53, %s1440_s30  ;;  %v592_v45 = vsel %vm403_vm1, %v587_v35, %v591_v36  ;;  %v448_v58 = vshll.u32 %v398_v46, 16  ;;  %v611_v59 = vsel %vm516_vm0, %v609_v47, %v610_v49  ;;  %v421_v61 = vrot.slane %v419_v51, 1  ;;  %v1195_v47 = vld [vmem:[%s1997_s2] sm:$0xff] }
  0x37   : > { %v424_v62 = vshll.u32 %v396_v50, 16  ;;  %v446_v1 = vor.u32 %v445_v55, %v441_v52  ;;  %v526_v10 = vrot.slane %v1687_v37, 1  ;;  %v527_v11 = vrot.slane %v398_v46, 1 }
  0x38   : > { %601 = vrot.lane.b32.xlu0 %v1636_v56, %s1440_s30  ;;  %v450_v3 = vrot.slane %v448_v58, 1  ;;  %v422_v4 = vor.u32 %v421_v61, %v417_v60  ;;  %v520_v12 = vrot.slane %v1693_v43, 1  ;;  %v521_v13 = vrot.slane %v396_v50, 1 }
  0x39   : > { %645 = vrot.lane.b32.xlu2 %v1653_v63, %s1441_s6  ;;  %v426_v5 = vrot.slane %v424_v62, 1  ;;  %v1723_v14 = vsel %vm516_vm0, %v526_v10, %v527_v11  ;;  %v650_v20 = vunpack.c.l.b16 %v338_v19 }
  0x3a   : > { %v1708_v6 = vsel %vm403_vm1, %v446_v1, %v450_v3  ;;  %v1726_v16 = vsel %vm516_vm0, %v520_v12, %v521_v13 }
  0x3b   : > { %v427_v7 = vsel %vm403_vm1, %v422_v4, %v426_v5  ;;  %v651_v24 = vpack.c.b16 %v650_v20, %v650_v20 }
  0x3d   : > { %v660_v29 = vshll.u32 %v651_v24, 16  ;;  %v681_v50 = vrot.slane %v651_v24, 1 }
  0x3e   : > { %641 = vrot.lane.b32.xlu1 %v1563_v2, %s1441_s6 }
  0x3f   : > { %v662_v30 = vrot.slane %v660_v29, 1 }
  0x40   : > { %624 = vrot.lane.b32.xlu0 %v1661_v8, %s1439_s14 }
  0x41   : > { %672 = vrot.lane.b32.xlu2 %v1613_v42, %s1442_s8 }
  0x46   : > { %504 = vrot.lane.b32.xlu1 %v1672_v21, %s1438_s12 }
  0x48   : > { %500 = vrot.lane.b32.xlu0 %v415_v25, %s1438_s12  ;;  %v655_v25 = vshll.u32 %v1194_v23, 16 }
  0x49   : > { %545 = vrot.lane.b32.xlu2 %v1683_v34, %s1437_s10 }
  0x4a   : > { %v657_v27 = vrot.slane %v655_v25, 1 }
  0x4e   : > { %541 = vrot.lane.b32.xlu1 %v519_v41, %s1437_s10 }
  0x50   : > { %676 = vrot.lane.b32.xlu0 %v592_v45, %s1442_s8 }
  0x51   : > { %562 = vrot.lane.b32.xlu2 %v1693_v43, %s1436_s5 }
  0x56   : > { %695 = vrot.lane.b32.xlu1 %v611_v59, %s1443_s27 }
  0x58   : > { %691 = vrot.lane.b32.xlu0 %v1609_v38, %s1443_s27 }
  0x59   : > { %597 = vrot.lane.b32.xlu2 %v1708_v6, %s1440_s30 }
  0x5e   : > { %593 = vrot.lane.b32.xlu1 %v427_v7, %s1440_s30 }
  0x60   : > { %566 = vrot.lane.b32.xlu0 %v1687_v37, %s1436_s5 }
  0x61   : > { %633 = vrot.lane.b32.xlu2 %v1633_v54, %s1441_s6 }
  0x66   : > { %616 = vrot.lane.b32.xlu1 %v1723_v14, %s1439_s14 }
  0x68   : > { %612 = vrot.lane.b32.xlu0 %v1726_v16, %s1439_s14 }
  0x69   : > { %668 = vrot.lane.b32.xlu2 %v1595_v28, %s1442_s8 }
  0x6e   : > { %664 = vrot.lane.b32.xlu1 %v1672_v21, %s1442_s8 }
  0x70   : > { %637 = vrot.lane.b32.xlu0 %v1559_v0, %s1441_s6 }
  0x71   : > { %510 = vrot.lane.b32.xlu2 %v1636_v56, %s1438_s12 }
  0x76   : > { %687 = vrot.lane.b32.xlu1 %v1589_v22, %s1443_s27 }
  0x78   : > { %683 = vrot.lane.b32.xlu0 %v1683_v34, %s1443_s27 }
  0x79   : > { %555 = vrot.lane.b32.xlu2 %v1661_v8, %s1437_s10 }
  0x7b   : > { %v1746_v17 = vpop.permute.xlu2 %570 }
  0x7e   : > { %551 = vrot.lane.b32.xlu1 %v1619_v48, %s1437_s10 }
  0x80   : > { %514 = vrot.lane.b32.xlu0 %v1630_v53, %s1438_s12 }
  0x81   : > { %603 = vrot.lane.b32.xlu2 %v1613_v42, %s1440_s30  ;;  %v653_v42 = vshrl.u32 %v1194_v23, 16 }
  0x83   : > { %v1754_v18 = vpop.permute.xlu2 %574 }
  0x86   : > { %576 = vrot.lane.b32.xlu1 %v1653_v63, %s1436_s5  ;;  %v658_v63 = vor.u32 %v657_v27, %v653_v42 }
  0x88   : > { %572 = vrot.lane.b32.xlu0 %v1563_v2, %s1436_s5  ;;  %v663_v32 = vsel %vm403_vm1, %v658_v63, %v662_v30 }
  0x89   : > { %626 = vrot.lane.b32.xlu2 %v611_v59, %s1439_s14 }
  0x8b   : > { %v1763_v26 = vpop.permute.xlu2 %620 }
  0x8e   : > { %622 = vrot.lane.b32.xlu1 %v1609_v38, %s1439_s14  ;;  %v839_v38 = vld [vmem:[%s1997_s2 + $0x10] sm:$0x3] }
  0x8f   : > { %v853_v36 = vunpack.c.l.b16 %v839_v38 }
  0x90   : > { %607 = vrot.lane.b32.xlu0 %v592_v45, %s1440_s30  ;;  %v1196_v45 = vld [vmem:[%s1997_s2 + $0x8] sm:$0xff] }
  0x91   : > { %502 = vrot.lane.b32.xlu2 %v427_v7, %s1438_s12  ;;  %v856_v40 = vpack.c.b16 %v853_v36, %v853_v36 }
  0x93   : > { %v1769_v31 = vpop.permute.xlu2 %645  ;;  %v878_v41 = vsel %vm876_vm2, %v856_v40, 0 }
  0x94   : > { %1249 = vmatpush.bf16.msra.mxu3 %v878_v41  ;;  %1248 = vmatpush.bf16.msra.mxu2 %v878_v41 }
  0x95   : > { %1247 = vmatpush.bf16.msra.mxu1 %v878_v41  ;;  %885 = vmatpush.bf16.msra.mxu0 %v878_v41 }
  0x96   : > { %647 = vrot.lane.b32.xlu1 %v1194_v23, %s1441_s6 }
  0x98   : > { %v550_v33 = vpop.permute.xlu1 %549  ;;  %643 = vrot.lane.b32.xlu0 %v1576_v15, %s1441_s6  ;;  %1252 = vmatpush.bf16.msra.mxu3 %v1196_v45 }
  0x99   : > { %678 = vrot.lane.b32.xlu2 %v663_v32, %s1442_s8  ;;  %1251 = vmatpush.bf16.msra.mxu2 %v1196_v45 }
  0x9a   : > { %v509_v35 = vpop.permute.xlu0 %508  ;;  %1250 = vmatpush.bf16.msra.mxu1 %v1196_v45  ;;  %886 = vmatpush.bf16.msra.mxu0 %v1196_v45 }
  0x9b   : > { %v1779_v39 = vpop.permute.xlu2 %672  ;;  %v709_v1 = vsel %vm699_vm3, %v1559_v0, %v509_v35 }
  0x9c   : > { %1255 = vmatpush.bf16.msra.mxu3 %v1195_v47 }
  0x9d   : > { %1254 = vmatpush.bf16.msra.mxu2 %v1195_v47 }
  0x9e   : > { %674 = vrot.lane.b32.xlu1 %v1630_v53, %s1442_s8  ;;  %1253 = vmatpush.bf16.msra.mxu1 %v1195_v47 }
  0x9f   : > { %887 = vmatpush.bf16.msra.mxu0 %v1195_v47 }
  0xa0   : > { %v554_v44 = vpop.permute.xlu1 %553  ;;  %506 = vrot.lane.b32.xlu0 %v1708_v6, %s1438_s12 }
  0xa1   : > { %693 = vrot.lane.b32.xlu2 %v1661_v8, %s1443_s27  ;;  %v680_v8 = vrot.slane %v1194_v23, 1 }
  0xa2   : > { %v513_v46 = vpop.permute.xlu0 %512 }
  0xa3   : > { %v1790_v53 = vpop.permute.xlu2 %545  ;;  %v682_v55 = vsel %vm516_vm0, %v680_v8, %v681_v50 }
  0xa6   : > { %547 = vrot.lane.b32.xlu1 %v1723_v14, %s1437_s10 }
  0xa8   : > { %v606_v49 = vpop.permute.xlu1 %605  ;;  %543 = vrot.lane.b32.xlu0 %v1726_v16, %s1437_s10 }
  0xa9   : > { %568 = vrot.lane.b32.xlu2 %v1559_v0, %s1436_s5 }
  0xaa   : > { %v602_v51 = vpop.permute.xlu0 %601 }
  0xab   : > { %v1801_v52 = vpop.permute.xlu2 %562 }
  0xae   : > { %564 = vrot.lane.b32.xlu1 %v1633_v54, %s1436_s5 }
  0xb0   : > { %v642_v58 = vpop.permute.xlu1 %641  ;;  %697 = vrot.lane.b32.xlu0 %v682_v55, %s1443_s27 }
  0xb1   : > { %614 = vrot.lane.b32.xlu2 %v1683_v34, %s1439_s14  ;;  %v713_v34 = vsel %vm699_vm3, %v1563_v2, %v513_v46 }
  0xb2   : > { %v625_v59 = vpop.permute.xlu0 %624  ;;  %v730_v3 = vsel %vm716_vm4, %v713_v34, %v554_v44 }
  0xb3   : > { %v598_v60 = vpop.permute.xlu2 %597  ;;  %v747_v0 = vsel %vm733_vm5, %v730_v3, %v1754_v18 }
  0xb4   : > { %v764_v7 = vsel %vm750_vm6, %v747_v0, %v606_v49 }
  0xb5   : > { %v781_v11 = vsel %vm767_vm7, %v764_v7, %v625_v59 }
  0xb6   : > { %599 = vrot.lane.b32.xlu1 %v1595_v28, %s1440_s30  ;;  %v726_v28 = vsel %vm716_vm4, %v709_v1, %v550_v33  ;;  %v798_v13 = vsel %vm784_vm8, %v781_v11, %v1769_v31 }
  0xb7   : > { %v743_v2 = vsel %vm733_vm5, %v726_v28, %v1746_v17 }
  0xb8   : > { %v505_v61 = vpop.permute.xlu1 %504  ;;  %595 = vrot.lane.b32.xlu0 %v1672_v21, %s1440_s30  ;;  %v760_v10 = vsel %vm750_vm6, %v743_v2, %v602_v51 }
  0xb9   : > { %639 = vrot.lane.b32.xlu2 %v1570_v9, %s1441_s6  ;;  %v705_v42 = vsel %vm699_vm3, %v1633_v54, %v505_v61 }
  0xba   : > { %v501_v62 = vpop.permute.xlu0 %500  ;;  %v722_v29 = vsel %vm716_vm4, %v705_v42, %v1790_v53 }
  0xbb   : > { %v634_v21 = vpop.permute.xlu2 %633  ;;  %v701_v63 = vsel %vm699_vm3, %v1639_v57, %v501_v62 }
  0xbe   : > { %635 = vrot.lane.b32.xlu1 %v1687_v37, %s1441_s6 }
  0xc0   : > { %v542_v4 = vpop.permute.xlu1 %541  ;;  %618 = vrot.lane.b32.xlu0 %v1589_v22, %s1439_s14  ;;  %v777_v22 = vsel %vm767_vm7, %v760_v10, %v1763_v26  ;;  %s268_s14 = sand.u32 1, %s1410_s16  }
  0xc1   : > { %685 = vrot.lane.b32.xlu2 %v1723_v14, %s1443_s27  ;;  %v794_v12 = vsel %vm784_vm8, %v777_v22, %v642_v58  ;;  %v718_v32 = vsel %vm716_vm4, %v701_v63, %v542_v4  ;;  %s1109_s30 = sshll.u32 %s268_s14, 6  ;;  %s978_s5 = scalar_lea.sflag [#allocation3], %s268_s14 }
  0xc2   : > { %v677_v5 = vpop.permute.xlu0 %676  ;;  %v735_v38 = vsel %vm733_vm5, %v718_v32, %v1801_v52  ;;  %s1926_s6 = scalar_lea.vmem [#allocation2], %s1109_s30 }
  0xc3   : > { %v815_v14 = vsel %vm801_vm10, %v798_v13, %v677_v5  ;;  %v669_v18 = vpop.permute.xlu2 %668 }
  0xc6   : > { %670 = vrot.lane.b32.xlu1 %v1636_v56, %s1442_s8  ;;  %v811_v56 = vsel %vm801_vm10, %v794_v12, %v1779_v39 }
  0xc8   : > { %v696_v16 = vpop.permute.xlu1 %695  ;;  %666 = vrot.lane.b32.xlu0 %v1708_v6, %s1442_s8  ;;  %s1197_s8 = sshll.u32 %s1418_s18, 4 }
  0xc9   : > { %v832_v17 = vsel %vm818_vm9, %v815_v14, %v696_v16 }
  0xca   : > { %1169 = vmatmul.msk.bf16.vlgmr.msra.gmra.mxu3 %vm859_vm11, %v832_v17  ;;  %v692_v19 = vpop.permute.xlu0 %691 }
  0xcb   : > { %v828_v20 = vsel %vm818_vm9, %v811_v56, %v692_v19  ;;  %v511_v25 = vpop.permute.xlu2 %510 }
  0xcc   : > { %1167 = vmatmul.msk.bf16.vlgmr.msra.gmra.mxu2 %vm859_vm11, %v828_v20  ;;  %v711_v61 = vsel %vm699_vm3, %v1570_v9, %v511_v25 }
  0xd0   : > { %v594_v23 = vpop.permute.xlu1 %593  ;;  %689 = vrot.lane.b32.xlu0 %v1619_v48, %s1443_s27  ;;  %s1174_s27 = sshll.u32 %s1422_s19, 5  ;;  %s993_s19 = sshll.u32 %s1926_s6, 4  ;;  %s994_s19 = int_to_ptr.vmem [resolvable:$true] %s993_s19 }
  0xd1   : > { %v752_v35 = vsel %vm750_vm6, %v735_v38, %v594_v23  ;;  %s990_s23 = sadd.s32 %s1197_s8, %s1174_s27 }
  0xd2   : > { %v567_v24 = vpop.permute.xlu0 %566  ;;  %s1175_s9 = sshll.u32 %s990_s23, 2  ;;  %s1360_s23 = scalar_lea.hbm %s1999_s4, 256 }
  0xd3   : > { %v556_v27 = vpop.permute.xlu2 %555  ;;  %v739_v30 = vsel %vm733_vm5, %v722_v29, %v567_v24  ;;  %s992_s18 = scalar_lea.hbm %s1999_s4, %s1175_s9 }
  0xd4   : > { %v756_v33 = vsel %vm750_vm6, %v739_v30, %v598_v60  ;;  %s995_s13 = sshll.u32 %s992_s18, 4  ;;  %s996_s13 = int_to_ptr.hbm [resolvable:$true] %s995_s13 }
  0xd5   : > { %s1354_s10 = sshra.s32 %s996_s13, 4  ;;  %s1355_s10 = int_to_ptr.hbm [resolvable:$true] %s1354_s10 }
  0xd6   : > { %s1356_s30 = scalar_lea.hbm %s1355_s10, 64  ;;  %p1361_p5 = scmp.lt.s32.totalorder %s1355_s10, %s1999_s4 }
  0xd7   : > { %p1357_p1 = scmp.ne.s32.totalorder %s1355_s10, %s1356_s30  ;;  %p1362_p6 = scmp.lt.s32.totalorder %s1360_s23, %s1356_s30 }
  0xd8   : > { %v617_v6 = vpop.permute.xlu1 %616 }
  0xd9   : > { %v773_v54 = vsel %vm767_vm7, %v756_v33, %v617_v6  ;;  %p1358_p2 = pnand %p1357_p1, %p1521_p3  ;;  %p1363_p7 = por %p1362_p6, %p1361_p5 }
  0xda   : > { %v613_v26 = vpop.permute.xlu0 %612 }
  0xdb   : > { %v769_v39 = vsel %vm767_vm7, %v752_v35, %v613_v26  ;;  %v604_v57 = vpop.permute.xlu2 %603  ;;  %p1359_p4 = pneg %p1358_p2 }
  0xdc   : > { %v786_v44 = vsel %vm784_vm8, %v769_v39, %v634_v21 }
  0xdd   : > { %p1364_p9 = pnand %p1363_p7, %p1359_p4 }
  0xe0   : > { %v665_v31 = vpop.permute.xlu1 %664 }
  0xe1   : > { %v803_v46 = vsel %vm801_vm10, %v786_v44, %v665_v31 }
  0xe2   : > { %v638_v48 = vpop.permute.xlu0 %637 }
  0xe3   : > { %v790_v36 = vsel %vm784_vm8, %v773_v54, %v638_v48  ;;  %v627_v8 = vpop.permute.xlu2 %626 }
  0xe4   : > { %v807_v41 = vsel %vm801_vm10, %v790_v36, %v669_v18 }
  0xe8   : > { %v688_v40 = vpop.permute.xlu1 %687 }
  0xe9   : > { %v824_v45 = vsel %vm818_vm9, %v807_v41, %v688_v40 }
  0xea   : > { %1165 = vmatmul.msk.bf16.vlgmr.msra.gmra.mxu1 %vm859_vm11, %v824_v45  ;;  %v684_v53 = vpop.permute.xlu0 %683 }
  0xeb   : > { %v820_v47 = vsel %vm818_vm9, %v803_v46, %v684_v53  ;;  %v503_v55 = vpop.permute.xlu2 %502 }
  0xec   : > { %1163 = vmatmul.msk.bf16.vlgmr.msra.gmra.mxu0 %vm859_vm11, %v820_v47  ;;  %v703_v42 = vsel %vm699_vm3, %v1693_v43, %v503_v55  ;;  %v1917_v47 = vld [vmem:[%s1998_s3] ss:$0 sm:$0xff] }
  0xf0   : > { %v552_v49 = vpop.permute.xlu1 %551 }
  0xf1   : > { %v728_v1 = vsel %vm716_vm4, %v711_v61, %v552_v49 }
  0xf2   : > { %v515_v50 = vpop.permute.xlu0 %514 }
  0xf3   : > { %v679_v60 = vpop.permute.xlu2 %678  ;;  %v715_v9 = vsel %vm699_vm3, %v1576_v15, %v515_v50 }
  0xf4   : > { %v732_v22 = vsel %vm716_vm4, %v715_v9, %v556_v27 }
  0xf8   : > { %v577_v51 = vpop.permute.xlu1 %576 }
  0xf9   : > { %v749_v12 = vsel %vm733_vm5, %v732_v22, %v577_v51 }
  0xfa   : > { %v573_v52 = vpop.permute.xlu0 %572 }
  0xfb   : > { %v745_v28 = vsel %vm733_vm5, %v728_v1, %v573_v52  ;;  %v694_v4 = vpop.permute.xlu2 %693 }
  0xfc   : > { %v762_v3 = vsel %vm750_vm6, %v745_v28, %v604_v57 }
 0x100   : > { %v623_v58 = vpop.permute.xlu1 %622 }
 0x101   : > { %v779_v21 = vsel %vm767_vm7, %v762_v3, %v623_v58 }
 0x102   : > { %v608_v59 = vpop.permute.xlu0 %607 }
 0x103   : > { %v766_v14 = vsel %vm750_vm6, %v749_v12, %v608_v59  ;;  %v569_v16 = vpop.permute.xlu2 %568 }
 0x104   : > { %v783_v17 = vsel %vm767_vm7, %v766_v14, %v627_v8 }
 0x108   : > { %v648_v62 = vpop.permute.xlu1 %647 }
 0x109   : > { %v800_v18 = vsel %vm784_vm8, %v783_v17, %v648_v62 }
 0x10a   : > { %v644_v34 = vpop.permute.xlu0 %643  ;;  %v817_v19 = vsel %vm801_vm10, %v800_v18, %v679_v60 }
 0x10b   : > { %v796_v0 = vsel %vm784_vm8, %v779_v21, %v644_v34  ;;  %v615_v15 = vpop.permute.xlu2 %614 }
 0x110   : > { %v675_v2 = vpop.permute.xlu1 %674 }
 0x111   : > { %v813_v5 = vsel %vm801_vm10, %v796_v0, %v675_v2 }
 0x112   : > { %v507_v7 = vpop.permute.xlu0 %506  ;;  %v830_v10 = vsel %vm818_vm9, %v813_v5, %v694_v4 }
 0x113   : > { %1168 = vmatmul.msk.bf16.gmra.mxu2 %vm859_vm11, %v830_v10  ;;  %v640_v6 = vpop.permute.xlu2 %639  ;;  %v707_v31 = vsel %vm699_vm3, %v1687_v37, %v507_v7 }
 0x118   : > { %v548_v11 = vpop.permute.xlu1 %547 }
 0x119   : > { %v724_v32 = vsel %vm716_vm4, %v707_v31, %v548_v11 }
 0x11a   : > { %v544_v13 = vpop.permute.xlu0 %543  ;;  %v741_v35 = vsel %vm733_vm5, %v724_v32, %v569_v16 }
 0x11b   : > { %v720_v27 = vsel %vm716_vm4, %v703_v42, %v544_v13  ;;  %v686_v33 = vpop.permute.xlu2 %685 }
 0x120   : > { %v565_v56 = vpop.permute.xlu1 %564 }
 0x121   : > { %v737_v29 = vsel %vm733_vm5, %v720_v27, %v565_v56 }
 0x122   : > { %v698_v20 = vpop.permute.xlu0 %697 }
 0x123   : > { %v834_v23 = vsel %vm818_vm9, %v817_v19, %v698_v20 }
 0x124   : > { %1170 = vmatmul.msk.bf16.gmra.mxu3 %vm859_vm11, %v834_v23 }
 0x128   : > { %v600_v25 = vpop.permute.xlu1 %599 }
 0x129   : > { %v758_v39 = vsel %vm750_vm6, %v741_v35, %v600_v25 }
 0x12a   : > { %v596_v24 = vpop.permute.xlu0 %595 }
 0x12b   : > { %v754_v30 = vsel %vm750_vm6, %v737_v29, %v596_v24 }
 0x12c   : > { %v771_v48 = vsel %vm767_vm7, %v754_v30, %v615_v15 }
 0x130   : > { %v636_v63 = vpop.permute.xlu1 %635 }
 0x131   : > { %v788_v38 = vsel %vm784_vm8, %v771_v48, %v636_v63 }
 0x132   : > { %v619_v26 = vpop.permute.xlu0 %618 }
 0x133   : > { %v775_v37 = vsel %vm767_vm7, %v758_v39, %v619_v26 }
 0x134   : > { %v792_v40 = vsel %vm784_vm8, %v775_v37, %v640_v6 }
 0x138   : > { %v671_v57 = vpop.permute.xlu1 %670 }
 0x139   : > { %v809_v41 = vsel %vm801_vm10, %v792_v40, %v671_v57 }
 0x13a   : > { %v667_v54 = vpop.permute.xlu0 %666 }
 0x13b   : > { %v805_v43 = vsel %vm801_vm10, %v788_v38, %v667_v54 }
 0x13c   : > { %v822_v36 = vsel %vm818_vm9, %v805_v43, %v686_v33 }
 0x13d   : > { %1164 = vmatmul.msk.bf16.gmra.mxu0 %vm859_vm11, %v822_v36 }
 0x142   : > { %v690_v44 = vpop.permute.xlu0 %689 }
 0x143   : > { %v826_v45 = vsel %vm818_vm9, %v809_v41, %v690_v44 }
 0x144   : > { %1166 = vmatmul.msk.bf16.gmra.mxu1 %vm859_vm11, %v826_v45 }
 0x14d   : > { %v919_v46 = vpop.f32.mrf.mxu3 }
 0x14e   : > { %v920_v49 = vadd.f32 %v1917_v47, %v919_v46 }
 0x14f   : > { %v909_v53 = vpop.f32.mrf.mxu2 }
 0x150   : > { %v910_v50 = vadd.f32 %v1917_v47, %v909_v53  ;;  %v941_v55 = vmax.f32 %v920_v49, 0.0 }
 0x152   : > { %v937_v60 = vmax.f32 %v910_v50, 0.0 }
 0x155   : > { %v921_v8 = vpop.f32.mrf.mxu3 }
 0x156   : > { %v922_v51 = vadd.f32 %v1917_v47, %v921_v8 }
 0x157   : > { %v911_v52 = vpop.f32.mrf.mxu2 }
 0x158   : > { %v942_v58 = vmax.f32 %v922_v51, 0.0  ;;  %v912_v59 = vadd.f32 %v1917_v47, %v911_v52 }
 0x15a   : > { %v1231_v61 = vpack.c.bf16 %v942_v58, %v941_v55  ;;  %v938_v62 = vmax.f32 %v912_v59, 0.0 }
 0x15c   : > { %1245 = vst [vmem:[%s1926_s6 + $0x30] sm:$0xff] %v1231_v61   ;;  %v1221_v1 = vpack.c.bf16 %v938_v62, %v937_v60 }
 0x15e   : > { %1243 = vst [vmem:[%s1926_s6 + $0x20] sm:$0xff] %v1221_v1  }
 0x167   : > { %v899_v34 = vpop.f32.mrf.mxu1 }
 0x168   : > { %v900_v3 = vadd.f32 %v1917_v47, %v899_v34 }
 0x169   : > { %v889_v28 = vpop.f32.mrf.mxu0 }
 0x16a   : > { %v890_v4 = vadd.f32 %v1917_v47, %v889_v28  ;;  %v933_v5 = vmax.f32 %v900_v3, 0.0 }
 0x16c   : > { %v929_v9 = vmax.f32 %v890_v4, 0.0 }
 0x16f   : > { %v901_v21 = vpop.f32.mrf.mxu1 }
 0x170   : > { %v902_v0 = vadd.f32 %v1917_v47, %v901_v21 }
 0x171   : > { %v891_v2 = vpop.f32.mrf.mxu0 }
 0x172   : > { %v934_v7 = vmax.f32 %v902_v0, 0.0  ;;  %v892_v10 = vadd.f32 %v1917_v47, %v891_v2 }
 0x174   : > { %v1211_v11 = vpack.c.bf16 %v934_v7, %v933_v5  ;;  %v930_v22 = vmax.f32 %v892_v10, 0.0 }
 0x176   : > { %1241 = vst [vmem:[%s1926_s6 + $0x10] sm:$0xff] %v1211_v11   ;;  %v1201_v12 = vpack.c.bf16 %v930_v22, %v929_v9 }
 0x178   : > { %1202 = vst [vmem:[%s1926_s6] sm:$0xff] %v1201_v12  }
 0x196   : > { %v914_v13 = vpop.f32.mrf.mxu2 }
 0x197   : > { %v915_v14 = vadd.f32 %v1917_v47, %v914_v13 }
 0x199   : > { %v939_v18 = vmax.f32 %v915_v14, 0.0 }
 0x19e   : > { %v916_v16 = vpop.f32.mrf.mxu2 }
 0x19f   : > { %v917_v17 = vadd.f32 %v1917_v47, %v916_v16 }
 0x1a1   : > { %v940_v56 = vmax.f32 %v917_v17, 0.0 }
 0x1a3   : > { %v1226_v19 = vpack.c.bf16 %v940_v56, %v939_v18 }
 0x1a5   : > { %1244 = vst [vmem:[%s1926_s6 + $0x28] sm:$0xff] %v1226_v19  }
 0x1a7   : > { %v924_v20 = vpop.f32.mrf.mxu3 }
 0x1a8   : > { %v925_v23 = vadd.f32 %v1917_v47, %v924_v20 }
 0x1aa   : > { %v943_v25 = vmax.f32 %v925_v23, 0.0 }
 0x1af   : > { %v926_v15 = vpop.f32.mrf.mxu3 }
 0x1b0   : > { %v927_v24 = vadd.f32 %v1917_v47, %v926_v15 }
 0x1b2   : > { %v944_v6 = vmax.f32 %v927_v24, 0.0 }
 0x1b4   : > { %v1236_v26 = vpack.c.bf16 %v944_v6, %v943_v25 }
 0x1b6   : > { %1246 = vst [vmem:[%s1926_s6 + $0x38] sm:$0xff] %v1236_v26  }
 0x1ba   : > { %v894_v42 = vpop.f32.mrf.mxu0 }
 0x1bb   : > { %v895_v27 = vadd.f32 %v1917_v47, %v894_v42 }
 0x1bd   : > { %v931_v31 = vmax.f32 %v895_v27, 0.0 }
 0x1c1   : > { %v904_v29 = vpop.f32.mrf.mxu1 }
 0x1c2   : > { %v896_v63 = vpop.f32.mrf.mxu0  ;;  %v905_v33 = vadd.f32 %v1917_v47, %v904_v29 }
 0x1c3   : > { %v897_v30 = vadd.f32 %v1917_v47, %v896_v63 }
 0x1c4   : > { %v935_v43 = vmax.f32 %v905_v33, 0.0 }
 0x1c5   : > { %v932_v32 = vmax.f32 %v897_v30, 0.0 }
 0x1c7   : > { %v1206_v48 = vpack.c.bf16 %v932_v32, %v931_v31 }
 0x1c9   : > { %1240 = vst [vmem:[%s1926_s6 + $0x8] sm:$0xff] %v1206_v48   ;;  %v906_v38 = vpop.f32.mrf.mxu1 }
 0x1ca   : > { %v907_v54 = vadd.f32 %v1917_v47, %v906_v38 }
 0x1cc   : > { %v936_v35 = vmax.f32 %v907_v54, 0.0 }
 0x1ce   : > { %v1216_v36 = vpack.c.bf16 %v936_v35, %v935_v43 }
 0x1d0   : > { %1242 = vst [vmem:[%s1926_s6 + $0x18] sm:$0xff] %v1216_v36  }
 0x1d1   : > { %1367 = shalt.err (!%p1364_p9)
}
 0x1d2   : > { %s1444_s14 = smov 64  }
 0x1d3   : > { %1259 = dma.vmem_to_hbm [thread:$0]  (%p1521_p3), %s994_s19, 1024, %s996_s13, %s978_s5, %s1444_s14, %s1444_s14, %s1438_s12  }
 0x1d4 PF: > { %p1265_p10 = scmp.ge.s32.totalorder %s1434_s22, 2  ;;  %s1010_s6 = sand.u32 1, %s1406_s15  }
 0x1d5   : > { %s1011_s24 = scalar_lea.sflag [#allocation3], %s1010_s6 }
 0x1d6   : > { %p1262_p11 = pnand %p1265_p10, %p1530_p8 }
 0x1d8   : > { %p1263_p12 = pneg %p1262_p11 }
 0x1da   : > { %1401 = dma.done.wait (%p1263_p12), %s1011_s24, 1024  }
 0x1db   : > { %1403 = vsyncadd (%p1263_p12), %s1011_s24, 4294966272  ;;  %s17_s22 = sadd.s32 1, %s1434_s22   ;;  %s2003_s15 = smov %s1410_s16 }
 0x1dc   : > { %p14_p13 = scmp.ge.s32.totalorder %s17_s22, 6   ;;  %s2004_s16 = smov %s1414_s17 }
 0x1dd   : > { %s2005_s17 = smov %s1539_s7  ;;  %s2006_s18 = smov %s1426_s20 }
 0x1de   : > { %s2007_s19 = smov %s1430_s21  ;;  %s2008_s20 = smov %s2011_s25 }
 0x1df   : > { %s2009_s21 = smov %s2015_s26  ;;  %16 = sbr.rel (!%p14_p13) target bundleno = 5 (0x5), region = 74 }
 0x1e4   :  { %1017 = vsyncpa [#allocation3], 1 }
 0x1e5   :  { %1019 = vsyncpa [#allocation3 + $0x1], 1 }

</bundles_post_ra>
